<compile_context>
chip_gen: v7x
topology: tpu7x:2x2x1
jax: 0.10.0
libtpu: 0.0.40
codegen_flags: <defaults>
</compile_context>

<pallas_src>
import jax
import jax.numpy as jnp
from jax.experimental import pallas as pl
from jax.experimental.pallas import tpu as pltpu


def _round_up(n, m):
    return ((n + m - 1) // m) * m


# ---------------------------------------------------------------------------
# Fused kernel: one (batch tile, frame) step per grid point.
# ---------------------------------------------------------------------------
def _critic_fused_kernel(div_flag_ref,                      # SMEM scalar prefetch
                         x_ref, act_ref, enc_w_ref, enc_b_ref,
                         w_eff_ref, proj_b_ref, ln_g_ref, ln_b_ref,
                         qw1o_ref, qw1a_ref, qb1_ref,
                         qw2_ref, qb2_ref, qw3_ref, qb3_ref,
                         out_ref, acc_ref):
    k = pl.program_id(1)
    nf = pl.num_programs(1)

    # ---- encoder on this frame block: uint8/f32 -> bf16, MXU, f32 acc -------
    xk = x_ref[...].astype(jnp.float32).astype(jnp.bfloat16)      # (TB, FE)
    zk = jnp.dot(xk, enc_w_ref[...], preferred_element_type=jnp.float32)
    # /255 applied to the tiny (TB, F) encoder output (global flag from SMEM).
    scale = jnp.where(div_flag_ref[0] > 0,
                      jnp.float32(1.0 / 255.0), jnp.float32(1.0))
    zk = zk * scale + enc_b_ref[...]                               # (TB, F) f32

    # ---- folded frame-delta projection, accumulated across the frame axis ---
    @pl.when(k == 0)
    def _():
        acc_ref[...] = jnp.broadcast_to(proj_b_ref[...], acc_ref.shape)

    acc_ref[...] += jnp.dot(zk, w_eff_ref[...],
                            preferred_element_type=jnp.float32)

    # ---- epilogue on the last frame: LayerNorm + twin Q heads ---------------
    @pl.when(k == nf - 1)
    def _():
        acc = acc_ref[...]
        mean = jnp.mean(acc, axis=-1, keepdims=True)
        var = jnp.mean((acc - mean) ** 2, axis=-1, keepdims=True)
        fproj = (acc - mean) * jax.lax.rsqrt(var + 1e-5)
        fproj = fproj * ln_g_ref[...] + ln_b_ref[...]

        a = act_ref[...]
        h = (jnp.dot(fproj.astype(jnp.bfloat16), qw1o_ref[...],
                     preferred_element_type=jnp.float32)
             + jnp.dot(a.astype(jnp.bfloat16), qw1a_ref[...],
                       preferred_element_type=jnp.float32)
             + qb1_ref[...])
        h = jnp.maximum(h, 0.0)
        h = jnp.dot(h.astype(jnp.bfloat16), qw2_ref[...],
                    preferred_element_type=jnp.float32) + qb2_ref[...]
        h = jnp.maximum(h, 0.0)
        out_ref[...] = (jnp.dot(h.astype(jnp.bfloat16), qw3_ref[...],
                                preferred_element_type=jnp.float32)
                        + qb3_ref[...])


# ---------------------------------------------------------------------------
# Parameter init (deterministic, mirrors the PyTorch __init__)
# ---------------------------------------------------------------------------
def _orthogonal(key, in_dim, out_dim):
    a = jax.random.normal(key, (max(in_dim, out_dim), min(in_dim, out_dim)),
                          dtype=jnp.float32)
    q, r = jnp.linalg.qr(a)
    q = q * jnp.sign(jnp.diagonal(r))
    if in_dim < out_dim:
        q = q.T
    return q.astype(jnp.float32)


def _uniform_linear(key, in_dim, out_dim):
    bound = 1.0 / float(in_dim) ** 0.5
    kw, kb = jax.random.split(key)
    w = jax.random.uniform(kw, (in_dim, out_dim), jnp.float32, -bound, bound)
    b = jax.random.uniform(kb, (1, out_dim), jnp.float32, -bound, bound)
    return w, b


def _init_single_q(key, in_dim, hidden_dim):
    k1, k2, k3 = jax.random.split(key, 3)
    return (_orthogonal(k1, in_dim, hidden_dim),
            _orthogonal(k2, hidden_dim, hidden_dim),
            _orthogonal(k3, hidden_dim, 1))


def init_critic(key, H, W, feature_dim, projection_dim, action_dim, hidden_dim):
    k_enc, k_proj, k_q1, k_q2 = jax.random.split(key, 4)
    fe = 3 * H * W
    fe_pad = _round_up(fe, 128)

    enc_w, enc_b = _uniform_linear(k_enc, fe, feature_dim)
    if fe_pad != fe:
        enc_w = jnp.pad(enc_w, ((0, fe_pad - fe), (0, 0)))   # zero rows: exact

    proj_w, proj_b = _uniform_linear(k_proj, 5 * feature_dim, projection_dim)
    # Fold the frame/delta concat into per-frame projection weights (exact for
    # the forward pass; must be rebuilt after any update to proj_w).
    F = feature_dim
    w0, w1_, w2 = proj_w[0:F], proj_w[F:2 * F], proj_w[2 * F:3 * F]
    w3, w4 = proj_w[3 * F:4 * F], proj_w[4 * F:5 * F]
    w_eff = jnp.stack([w0 - w3, w1_ + w3 - w4, w2 + w4], axis=0)  # (3, F, P)

    q1_w1, q1_w2, q1_w3 = _init_single_q(k_q1, projection_dim + action_dim,
                                         hidden_dim)
    q2_w1, q2_w2, q2_w3 = _init_single_q(k_q2, projection_dim + action_dim,
                                         hidden_dim)

    wcat = jnp.concatenate([q1_w1, q2_w1], axis=1)               # (P+A, 2H)
    zhh = jnp.zeros((hidden_dim, hidden_dim), jnp.float32)
    zh1 = jnp.zeros((hidden_dim, 1), jnp.float32)
    qw2 = jnp.block([[q1_w2, zhh], [zhh, q2_w2]])                # (2H, 2H)
    qw3 = jnp.block([[q1_w3, zh1], [zh1, q2_w3]])                # (2H, 2)

    return {
        "enc_w": enc_w.astype(jnp.bfloat16),     # (fe_pad, F) bf16 (MXU-native)
        "enc_b": enc_b,                          # (1, F) f32
        "w_eff": w_eff,                          # (3, F, P) f32
        "proj_b": proj_b,                        # (1, P) f32
        "ln_gamma": jnp.ones((1, projection_dim), jnp.float32),
        "ln_beta": jnp.zeros((1, projection_dim), jnp.float32),
        "qw1_obs": wcat[:projection_dim].astype(jnp.bfloat16),   # (P, 2H)
        "qw1_act": wcat[projection_dim:].astype(jnp.bfloat16),   # (A, 2H)
        "qb1": jnp.zeros((1, 2 * hidden_dim), jnp.float32),
        "qw2": qw2.astype(jnp.bfloat16),
        "qb2": jnp.zeros((1, 2 * hidden_dim), jnp.float32),
        "qw3": qw3.astype(jnp.bfloat16),
        "qb3": jnp.zeros((1, 2), jnp.float32),
    }


# ---------------------------------------------------------------------------
# Critic forward (from_obs=True; detach / freeze_encoder are forward no-ops)
# ---------------------------------------------------------------------------
def _choose_tile_b(batch, fe_pad, itemsize):
    # ~4 MiB x block (double-buffered by the pipeline); multiple of 32 so that
    # uint8 / bf16 / f32 blocks are all sublane-tile aligned; capped at 512.
    tb = (4 * 1024 * 1024) // max(1, fe_pad * itemsize)
    tb = max(32, min(512, (tb // 32) * 32))
    return min(tb, _round_up(batch, 32))


def critic_forward(params, inputs, actions):
    """Critic.forward(inputs, actions, from_obs=True) -> (q1, q2)."""
    B, C, H, W = inputs.shape
    assert C % 3 == 0, "Inputs must be stacked RGB frames"
    nf = C // 3
    assert nf == 3, "frame-delta fold assumes 3 stacked frames (proj in = 5*F)"
    fe = 3 * H * W

    fe_pad, feat = params["enc_w"].shape
    proj = params["proj_b"].shape[-1]
    adim = actions.shape[-1]
    h2 = params["qb1"].shape[-1]                 # 2 * hidden_dim
    assert fe_pad >= fe and fe_pad % 128 == 0

    # Global /255 decision (PyTorch: `if inputs.max() > 1`), hoisted out of the
    # kernel so batch tiling cannot change its semantics.
    div_flag = (jnp.max(inputs) > 1).astype(jnp.int32).reshape(1)

    # Keep x at its narrowest dtype; the upcast happens per block in-kernel.
    x = inputs.reshape(B, nf, fe)
    if x.dtype not in (jnp.uint8, jnp.int8, jnp.bfloat16, jnp.float32):
        x = x.astype(jnp.float32)
    if fe_pad != fe:
        # TODO(synk): lane-pad copy only taken when 3*H*W is not 128-aligned.
        x = jnp.pad(x, ((0, 0), (0, 0), (0, fe_pad - fe)))
    x = x.reshape(B, nf * fe_pad)

    tile_b = _choose_tile_b(B, fe_pad, jnp.dtype(x.dtype).itemsize)
    b_pad = _round_up(B, tile_b)
    acts = actions.astype(jnp.float32)
    if b_pad != B:
        x = jnp.pad(x, ((0, b_pad - B), (0, 0)))
        acts = jnp.pad(acts, ((0, b_pad - B), (0, 0)))

    grid = (b_pad // tile_b, nf)

    out = pl.pallas_call(
        _critic_fused_kernel,
        out_shape=jax.ShapeDtypeStruct((b_pad, 2), jnp.float32),
        grid_spec=pltpu.PrefetchScalarGridSpec(
            num_scalar_prefetch=1,
            grid=grid,
            in_specs=[
                # x: one frame of one batch tile per grid step (streamed).
                pl.BlockSpec((tile_b, fe_pad), lambda i, k, flag: (i, k)),
                # actions: resident across the frame axis.
                pl.BlockSpec((tile_b, adim), lambda i, k, flag: (i, 0)),
                # weights / biases: constant index maps -> VMEM-resident.
                pl.BlockSpec((fe_pad, feat), lambda i, k, flag: (0, 0)),
                pl.BlockSpec((1, feat), lambda i, k, flag: (0, 0)),
                # folded per-frame projection weight, selected by frame index.
                pl.BlockSpec((None, feat, proj), lambda i, k, flag: (k, 0, 0)),
                pl.BlockSpec((1, proj), lambda i, k, flag: (0, 0)),
                pl.BlockSpec((1, proj), lambda i, k, flag: (0, 0)),
                pl.BlockSpec((1, proj), lambda i, k, flag: (0, 0)),
                pl.BlockSpec((proj, h2), lambda i, k, flag: (0, 0)),
                pl.BlockSpec((adim, h2), lambda i, k, flag: (0, 0)),
                pl.BlockSpec((1, h2), lambda i, k, flag: (0, 0)),
                pl.BlockSpec((h2, h2), lambda i, k, flag: (0, 0)),
                pl.BlockSpec((1, h2), lambda i, k, flag: (0, 0)),
                pl.BlockSpec((h2, 2), lambda i, k, flag: (0, 0)),
                pl.BlockSpec((1, 2), lambda i, k, flag: (0, 0)),
            ],
            out_specs=pl.BlockSpec((tile_b, 2), lambda i, k, flag: (i, 0)),
            scratch_shapes=[pltpu.VMEM((tile_b, proj), jnp.float32)],
        ),
        compiler_params=pltpu.CompilerParams(
            dimension_semantics=("parallel", "arbitrary"),
            vmem_limit_bytes=32 * 1024 * 1024,
        ),
    )(div_flag, x, acts,
      params["enc_w"], params["enc_b"],
      params["w_eff"], params["proj_b"],
      params["ln_gamma"], params["ln_beta"],
      params["qw1_obs"], params["qw1_act"], params["qb1"],
      params["qw2"], params["qb2"], params["qw3"], params["qb3"])

    return out[:B, 0:1], out[:B, 1:2]


# ---------------------------------------------------------------------------
# Pure-JAX mirror of the kernel math (same dtype policy) for validation.
# ---------------------------------------------------------------------------
def critic_reference(params, inputs, actions):
    B, C, H, W = inputs.shape
    nf = C // 3
    fe = 3 * H * W
    scale = jnp.where(jnp.max(inputs) > 1,
                      jnp.float32(1.0 / 255.0), jnp.float32(1.0))
    x = inputs.reshape(B, nf, fe).astype(jnp.float32).astype(jnp.bfloat16)
    enc_w = params["enc_w"][:fe]
    acc = jnp.broadcast_to(params["proj_b"], (B, params["proj_b"].shape[-1]))
    for k in range(nf):
        zk = jnp.dot(x[:, k], enc_w, preferred_element_type=jnp.float32)
        zk = zk * scale + params["enc_b"]
        acc = acc + jnp.dot(zk, params["w_eff"][k],
                            preferred_element_type=jnp.float32)
    mean = jnp.mean(acc, axis=-1, keepdims=True)
    var = jnp.mean((acc - mean) ** 2, axis=-1, keepdims=True)
    fproj = (acc - mean) * jax.lax.rsqrt(var + 1e-5)
    fproj = fproj * params["ln_gamma"] + params["ln_beta"]
    a = actions.astype(jnp.float32)
    h = (jnp.dot(fproj.astype(jnp.bfloat16), params["qw1_obs"],
                 preferred_element_type=jnp.float32)
         + jnp.dot(a.astype(jnp.bfloat16), params["qw1_act"],
                   preferred_element_type=jnp.float32)
         + params["qb1"])
    h = jnp.maximum(h, 0.0)
    h = jnp.dot(h.astype(jnp.bfloat16), params["qw2"],
                preferred_element_type=jnp.float32) + params["qb2"]
    h = jnp.maximum(h, 0.0)
    q = (jnp.dot(h.astype(jnp.bfloat16), params["qw3"],
                 preferred_element_type=jnp.float32) + params["qb3"])
    return q[:, 0:1], q[:, 1:2]


# ---------------------------------------------------------------------------
if __name__ == "__main__":
    B, NB_FRAMES, H, W = 2, 3, 16, 16          # 3 stacked RGB frames -> 9 channels
    FEATURE_DIM, PROJECTION_DIM = 32, 32       # proj input = 5 * feature_dim = 160
    ACTION_DIM, HIDDEN_DIM = 4, 32

    key = jax.random.PRNGKey(0)
    k_params, k_x, k_a = jax.random.split(key, 3)

    params = init_critic(k_params, H, W, FEATURE_DIM, PROJECTION_DIM,
                         ACTION_DIM, HIDDEN_DIM)

    # uint8 pixel observations: narrowest DMA dtype, exercises the /255 path.
    inputs_u8 = jax.random.randint(
        k_x, (B, 3 * NB_FRAMES, H, W), 0, 256, dtype=jnp.int32).astype(jnp.uint8)
    actions = jax.random.uniform(k_a, (B, ACTION_DIM), jnp.float32, -1.0, 1.0)

    fwd = jax.jit(critic_forward)

    q1, q2 = fwd(params, inputs_u8, actions)
    jax.block_until_ready((q1, q2))
    r1, r2 = critic_reference(params, inputs_u8, actions)
    assert q1.shape == (B, 1) and q2.shape == (B, 1)
    assert jnp.all(jnp.isfinite(q1)) and jnp.all(jnp.isfinite(q2))
    assert jnp.allclose(q1, r1, atol=1e-2, rtol=1e-2)
    assert jnp.allclose(q2, r2, atol=1e-2, rtol=1e-2)

    # float observations already in [0, 1]: exercises the no-/255 path.
    inputs_f32 = inputs_u8.astype(jnp.float32) / 255.0
    q1f, q2f = fwd(params, inputs_f32, actions)
    jax.block_until_ready((q1f, q2f))
    r1f, r2f = critic_reference(params, inputs_f32, actions)
    assert jnp.allclose(q1f, r1f, atol=1e-2, rtol=1e-2)
    assert jnp.allclose(q2f, r2f, atol=1e-2, rtol=1e-2)

    print("KERNEL_OK")
</pallas_src>

<mosaic_0001>
module attributes {stable_mosaic.version = 11 : i64} {
  func.func @_critic_fused_kernel(%arg0: i32, %arg1: i32, %arg2: memref<1xi32, #tpu.memory_space<smem>>, %arg3: memref<32x768xi8, #tpu.memory_space<vmem>>, %arg4: memref<32x4xf32, #tpu.memory_space<vmem>>, %arg5: memref<768x32xbf16, #tpu.memory_space<vmem>>, %arg6: memref<1x32xf32, #tpu.memory_space<vmem>>, %arg7: memref<1x32x32xf32, #tpu.memory_space<vmem>>, %arg8: memref<1x32xf32, #tpu.memory_space<vmem>>, %arg9: memref<1x32xf32, #tpu.memory_space<vmem>>, %arg10: memref<1x32xf32, #tpu.memory_space<vmem>>, %arg11: memref<32x64xbf16, #tpu.memory_space<vmem>>, %arg12: memref<4x64xbf16, #tpu.memory_space<vmem>>, %arg13: memref<1x64xf32, #tpu.memory_space<vmem>>, %arg14: memref<64x64xbf16, #tpu.memory_space<vmem>>, %arg15: memref<1x64xf32, #tpu.memory_space<vmem>>, %arg16: memref<64x2xbf16, #tpu.memory_space<vmem>>, %arg17: memref<1x2xf32, #tpu.memory_space<vmem>>, %arg18: memref<32x2xf32, #tpu.memory_space<vmem>>, %arg19: memref<32x32xf32, #tpu.memory_space<vmem>>) attributes {dimension_semantics = [#tpu.dimension_semantics<parallel>, #tpu.dimension_semantics<arbitrary>], iteration_bounds = array<i64: 1, 3>, scalar_prefetch = 1 : i64, scratch_operands = 1 : i64, tpu.core_type = #tpu.core_type<tc>, window_params = [{transform_indices = @transform_0, window_bounds = array<i64: 32, 768>}, {transform_indices = @transform_1, window_bounds = array<i64: 32, 4>}, {pipeline_mode = #tpu.pipeline_mode<synchronous>, transform_indices = @transform_2, window_bounds = array<i64: 768, 32>}, {pipeline_mode = #tpu.pipeline_mode<synchronous>, transform_indices = @transform_3, window_bounds = array<i64: 1, 32>}, {transform_indices = @transform_4, window_bounds = array<i64: 1, 32, 32>}, {pipeline_mode = #tpu.pipeline_mode<synchronous>, transform_indices = @transform_5, window_bounds = array<i64: 1, 32>}, {pipeline_mode = #tpu.pipeline_mode<synchronous>, transform_indices = @transform_6, window_bounds = array<i64: 1, 32>}, {pipeline_mode = #tpu.pipeline_mode<synchronous>, transform_indices = @transform_7, window_bounds = array<i64: 1, 32>}, {pipeline_mode = #tpu.pipeline_mode<synchronous>, transform_indices = @transform_8, window_bounds = array<i64: 32, 64>}, {pipeline_mode = #tpu.pipeline_mode<synchronous>, transform_indices = @transform_9, window_bounds = array<i64: 4, 64>}, {pipeline_mode = #tpu.pipeline_mode<synchronous>, transform_indices = @transform_10, window_bounds = array<i64: 1, 64>}, {pipeline_mode = #tpu.pipeline_mode<synchronous>, transform_indices = @transform_11, window_bounds = array<i64: 64, 64>}, {pipeline_mode = #tpu.pipeline_mode<synchronous>, transform_indices = @transform_12, window_bounds = array<i64: 1, 64>}, {pipeline_mode = #tpu.pipeline_mode<synchronous>, transform_indices = @transform_13, window_bounds = array<i64: 64, 2>}, {pipeline_mode = #tpu.pipeline_mode<synchronous>, transform_indices = @transform_14, window_bounds = array<i64: 1, 2>}, {transform_indices = @transform_15, window_bounds = array<i64: 32, 2>}]} {
    %c0 = arith.constant 0 : index
    %c0_0 = arith.constant 0 : index
    %0 = vector.load %arg3[%c0, %c0_0] : memref<32x768xi8, #tpu.memory_space<vmem>>, vector<32x768xi8>
    %1 = arith.uitofp %0 : vector<32x768xi8> to vector<32x768xf32>
    %2 = arith.truncf %1 : vector<32x768xf32> to vector<32x768xbf16>
    %c0_1 = arith.constant 0 : index
    %c0_2 = arith.constant 0 : index
    %3 = vector.load %arg5[%c0_1, %c0_2] : memref<768x32xbf16, #tpu.memory_space<vmem>>, vector<768x32xbf16>
    %cst = arith.constant dense<0.000000e+00> : vector<32x32xf32>
    %4 = tpu.matmul %2, %3, %cst {dimension_numbers = #tpu.dot_dimension_numbers<[1], [0], [0], [1], [0, 0, 1, 1], [], []>} : vector<32x768xbf16>, vector<768x32xbf16>, vector<32x32xf32> -> vector<32x32xf32>
    %c0_3 = arith.constant 0 : index
    %5 = memref.load %arg2[%c0_3] : memref<1xi32, #tpu.memory_space<smem>>
    %c0_i32 = arith.constant 0 : i32
    %6 = arith.cmpi sgt, %5, %c0_i32 : i32
    %cst_4 = arith.constant 0.00392156886 : f32
    %cst_5 = arith.constant 1.000000e+00 : f32
    %7 = arith.select %6, %cst_4, %cst_5 : f32
    %8 = vector.broadcast %7 : f32 to vector<32x32xf32>
    %9 = arith.mulf %4, %8 : vector<32x32xf32>
    %c0_6 = arith.constant 0 : index
    %c0_7 = arith.constant 0 : index
    %10 = vector.load %arg6[%c0_6, %c0_7] : memref<1x32xf32, #tpu.memory_space<vmem>>, vector<1x32xf32>
    %11 = vector.broadcast %10 : vector<1x32xf32> to vector<32x32xf32>
    %12 = arith.addf %9, %11 : vector<32x32xf32>
    %c0_i32_8 = arith.constant 0 : i32
    %13 = arith.cmpi eq, %arg1, %c0_i32_8 : i32
    %14 = arith.extui %13 : i1 to i32
    %c0_i32_9 = arith.constant 0 : i32
    %15 = arith.cmpi ne, %14, %c0_i32_9 : i32
    scf.if %15 {
      %c0_19 = arith.constant 0 : index
      %c0_20 = arith.constant 0 : index
      %25 = vector.load %arg8[%c0_19, %c0_20] : memref<1x32xf32, #tpu.memory_space<vmem>>, vector<1x32xf32>
      %26 = vector.shape_cast %25 : vector<1x32xf32> to vector<1x32xf32>
      %27 = vector.broadcast %26 : vector<1x32xf32> to vector<32x32xf32>
      %c0_21 = arith.constant 0 : index
      %c0_22 = arith.constant 0 : index
      %28 = vector.load %arg19[%c0_21, %c0_22] : memref<32x32xf32, #tpu.memory_space<vmem>>, vector<32x32xf32>
      tpu.vector_store %arg19[%c0_21, %c0_22], %27 {strides = array<i32>} : memref<32x32xf32, #tpu.memory_space<vmem>>, vector<32x32xf32>,
    } else {
    }
    %c0_10 = arith.constant 0 : index
    %c0_11 = arith.constant 0 : index
    %16 = vector.load %arg19[%c0_10, %c0_11] : memref<32x32xf32, #tpu.memory_space<vmem>>, vector<32x32xf32>
    %c0_12 = arith.constant 0 : index
    %c0_13 = arith.constant 0 : index
    %c0_14 = arith.constant 0 : index
    %17 = vector.load %arg7[%c0_12, %c0_13, %c0_14] : memref<1x32x32xf32, #tpu.memory_space<vmem>>, vector<1x32x32xf32>
    %18 = vector.shape_cast %17 : vector<1x32x32xf32> to vector<32x32xf32>
    %cst_15 = arith.constant dense<0.000000e+00> : vector<32x32xf32>
    %19 = tpu.matmul %12, %18, %cst_15 {dimension_numbers = #tpu.dot_dimension_numbers<[1], [0], [0], [1], [0, 0, 1, 1], [], []>} : vector<32x32xf32>, vector<32x32xf32>, vector<32x32xf32> -> vector<32x32xf32>
    %20 = arith.addf %16, %19 : vector<32x32xf32>
    %c0_16 = arith.constant 0 : index
    %c0_17 = arith.constant 0 : index
    %21 = vector.load %arg19[%c0_16, %c0_17] : memref<32x32xf32, #tpu.memory_space<vmem>>, vector<32x32xf32>
    tpu.vector_store %arg19[%c0_16, %c0_17], %20 {strides = array<i32>} : memref<32x32xf32, #tpu.memory_space<vmem>>, vector<32x32xf32>,
    %c2_i32 = arith.constant 2 : i32
    %22 = arith.cmpi eq, %arg1, %c2_i32 : i32
    %23 = arith.extui %22 : i1 to i32
    %c0_i32_18 = arith.constant 0 : i32
    %24 = arith.cmpi ne, %23, %c0_i32_18 : i32
    scf.if %24 {
      %c0_19 = arith.constant 0 : index
      %c0_20 = arith.constant 0 : index
      %25 = vector.load %arg19[%c0_19, %c0_20] : memref<32x32xf32, #tpu.memory_space<vmem>>, vector<32x32xf32>
      %cst_21 = arith.constant dense<0.000000e+00> : vector<32xf32>
      %26 = vector.multi_reduction <add>, %25, %cst_21 [1] : vector<32x32xf32> to vector<32xf32>
      %27 = vector.shape_cast %26 : vector<32xf32> to vector<32x1xf32>
      %cst_22 = arith.constant 3.200000e+01 : f32
      %28 = vector.broadcast %cst_22 : f32 to vector<32x1xf32>
      %29 = arith.divf %27, %28 : vector<32x1xf32>
      %30 = vector.broadcast %29 : vector<32x1xf32> to vector<32x32xf32>
      %31 = arith.subf %25, %30 : vector<32x32xf32>
      %32 = arith.mulf %31, %31 : vector<32x32xf32>
      %cst_23 = arith.constant dense<0.000000e+00> : vector<32xf32>
      %33 = vector.multi_reduction <add>, %32, %cst_23 [1] : vector<32x32xf32> to vector<32xf32>
      %34 = vector.shape_cast %33 : vector<32xf32> to vector<32x1xf32>
      %cst_24 = arith.constant 3.200000e+01 : f32
      %35 = vector.broadcast %cst_24 : f32 to vector<32x1xf32>
      %36 = arith.divf %34, %35 : vector<32x1xf32>
      %37 = vector.broadcast %29 : vector<32x1xf32> to vector<32x32xf32>
      %38 = arith.subf %25, %37 : vector<32x32xf32>
      %cst_25 = arith.constant 9.99999974E-6 : f32
      %39 = vector.broadcast %cst_25 : f32 to vector<32x1xf32>
      %40 = arith.addf %36, %39 : vector<32x1xf32>
      %41 = math.rsqrt %40 : vector<32x1xf32>
      %42 = vector.broadcast %41 : vector<32x1xf32> to vector<32x32xf32>
      %43 = arith.mulf %38, %42 : vector<32x32xf32>
      %c0_26 = arith.constant 0 : index
      %c0_27 = arith.constant 0 : index
      %44 = vector.load %arg9[%c0_26, %c0_27] : memref<1x32xf32, #tpu.memory_space<vmem>>, vector<1x32xf32>
      %45 = vector.broadcast %44 : vector<1x32xf32> to vector<32x32xf32>
      %46 = arith.mulf %43, %45 : vector<32x32xf32>
      %c0_28 = arith.constant 0 : index
      %c0_29 = arith.constant 0 : index
      %47 = vector.load %arg10[%c0_28, %c0_29] : memref<1x32xf32, #tpu.memory_space<vmem>>, vector<1x32xf32>
      %48 = vector.broadcast %47 : vector<1x32xf32> to vector<32x32xf32>
      %49 = arith.addf %46, %48 : vector<32x32xf32>
      %c0_30 = arith.constant 0 : index
      %c0_31 = arith.constant 0 : index
      %50 = vector.load %arg4[%c0_30, %c0_31] : memref<32x4xf32, #tpu.memory_space<vmem>>, vector<32x4xf32>
      %51 = arith.truncf %49 : vector<32x32xf32> to vector<32x32xbf16>
      %c0_32 = arith.constant 0 : index
      %c0_33 = arith.constant 0 : index
      %52 = vector.load %arg11[%c0_32, %c0_33] : memref<32x64xbf16, #tpu.memory_space<vmem>>, vector<32x64xbf16>
      %cst_34 = arith.constant dense<0.000000e+00> : vector<32x64xf32>
      %53 = tpu.matmul %51, %52, %cst_34 {dimension_numbers = #tpu.dot_dimension_numbers<[1], [0], [0], [1], [0, 0, 1, 1], [], []>} : vector<32x32xbf16>, vector<32x64xbf16>, vector<32x64xf32> -> vector<32x64xf32>
      %54 = arith.truncf %50 : vector<32x4xf32> to vector<32x4xbf16>
      %c0_35 = arith.constant 0 : index
      %c0_36 = arith.constant 0 : index
      %55 = vector.load %arg12[%c0_35, %c0_36] : memref<4x64xbf16, #tpu.memory_space<vmem>>, vector<4x64xbf16>
      %cst_37 = arith.constant dense<0.000000e+00> : vector<32x64xf32>
      %56 = tpu.matmul %54, %55, %cst_37 {dimension_numbers = #tpu.dot_dimension_numbers<[1], [0], [0], [1], [0, 0, 1, 1], [], []>} : vector<32x4xbf16>, vector<4x64xbf16>, vector<32x64xf32> -> vector<32x64xf32>
      %57 = arith.addf %53, %56 : vector<32x64xf32>
      %c0_38 = arith.constant 0 : index
      %c0_39 = arith.constant 0 : index
      %58 = vector.load %arg13[%c0_38, %c0_39] : memref<1x64xf32, #tpu.memory_space<vmem>>, vector<1x64xf32>
      %59 = vector.broadcast %58 : vector<1x64xf32> to vector<32x64xf32>
      %60 = arith.addf %57, %59 : vector<32x64xf32>
      %cst_40 = arith.constant 0.000000e+00 : f32
      %61 = vector.broadcast %cst_40 : f32 to vector<32x64xf32>
      %62 = arith.maximumf %60, %61 : vector<32x64xf32>
      %63 = arith.truncf %62 : vector<32x64xf32> to vector<32x64xbf16>
      %c0_41 = arith.constant 0 : index
      %c0_42 = arith.constant 0 : index
      %64 = vector.load %arg14[%c0_41, %c0_42] : memref<64x64xbf16, #tpu.memory_space<vmem>>, vector<64x64xbf16>
      %cst_43 = arith.constant dense<0.000000e+00> : vector<32x64xf32>
      %65 = tpu.matmul %63, %64, %cst_43 {dimension_numbers = #tpu.dot_dimension_numbers<[1], [0], [0], [1], [0, 0, 1, 1], [], []>} : vector<32x64xbf16>, vector<64x64xbf16>, vector<32x64xf32> -> vector<32x64xf32>
      %c0_44 = arith.constant 0 : index
      %c0_45 = arith.constant 0 : index
      %66 = vector.load %arg15[%c0_44, %c0_45] : memref<1x64xf32, #tpu.memory_space<vmem>>, vector<1x64xf32>
      %67 = vector.broadcast %66 : vector<1x64xf32> to vector<32x64xf32>
      %68 = arith.addf %65, %67 : vector<32x64xf32>
      %cst_46 = arith.constant 0.000000e+00 : f32
      %69 = vector.broadcast %cst_46 : f32 to vector<32x64xf32>
      %70 = arith.maximumf %68, %69 : vector<32x64xf32>
      %71 = arith.truncf %70 : vector<32x64xf32> to vector<32x64xbf16>
      %c0_47 = arith.constant 0 : index
      %c0_48 = arith.constant 0 : index
      %72 = vector.load %arg16[%c0_47, %c0_48] : memref<64x2xbf16, #tpu.memory_space<vmem>>, vector<64x2xbf16>
      %cst_49 = arith.constant dense<0.000000e+00> : vector<32x2xf32>
      %73 = tpu.matmul %71, %72, %cst_49 {dimension_numbers = #tpu.dot_dimension_numbers<[1], [0], [0], [1], [0, 0, 1, 1], [], []>} : vector<32x64xbf16>, vector<64x2xbf16>, vector<32x2xf32> -> vector<32x2xf32>
      %c0_50 = arith.constant 0 : index
      %c0_51 = arith.constant 0 : index
      %74 = vector.load %arg17[%c0_50, %c0_51] : memref<1x2xf32, #tpu.memory_space<vmem>>, vector<1x2xf32>
      %75 = vector.broadcast %74 : vector<1x2xf32> to vector<32x2xf32>
      %76 = arith.addf %73, %75 : vector<32x2xf32>
      %c0_52 = arith.constant 0 : index
      %c0_53 = arith.constant 0 : index
      %77 = vector.load %arg18[%c0_52, %c0_53] : memref<32x2xf32, #tpu.memory_space<vmem>>, vector<32x2xf32>
      tpu.vector_store %arg18[%c0_52, %c0_53], %76 {strides = array<i32>} : memref<32x2xf32, #tpu.memory_space<vmem>>, vector<32x2xf32>,
    } else {
    }
    return
  }
  func.func @transform_0(%arg0: i32, %arg1: i32, %arg2: memref<1xi32, #tpu.memory_space<smem>>) -> (i32, i32) {
    %c0_i32 = arith.constant 0 : i32
    return %arg0, %arg1 : i32, i32
  }
  func.func @transform_1(%arg0: i32, %arg1: i32, %arg2: memref<1xi32, #tpu.memory_space<smem>>) -> (i32, i32) {
    %c0_i32 = arith.constant 0 : i32
    %c0_i32_0 = arith.constant 0 : i32
    return %arg0, %c0_i32 : i32, i32
  }
  func.func @transform_2(%arg0: i32, %arg1: i32, %arg2: memref<1xi32, #tpu.memory_space<smem>>) -> (i32, i32) {
    %c0_i32 = arith.constant 0 : i32
    %c0_i32_0 = arith.constant 0 : i32
    %c0_i32_1 = arith.constant 0 : i32
    return %c0_i32, %c0_i32_0 : i32, i32
  }
  func.func @transform_3(%arg0: i32, %arg1: i32, %arg2: memref<1xi32, #tpu.memory_space<smem>>) -> (i32, i32) {
    %c0_i32 = arith.constant 0 : i32
    %c0_i32_0 = arith.constant 0 : i32
    %c0_i32_1 = arith.constant 0 : i32
    return %c0_i32, %c0_i32_0 : i32, i32
  }
  func.func @transform_4(%arg0: i32, %arg1: i32, %arg2: memref<1xi32, #tpu.memory_space<smem>>) -> (i32, i32, i32) {
    %c0_i32 = arith.constant 0 : i32
    %c0_i32_0 = arith.constant 0 : i32
    %c0_i32_1 = arith.constant 0 : i32
    return %arg1, %c0_i32, %c0_i32_0 : i32, i32, i32
  }
  func.func @transform_5(%arg0: i32, %arg1: i32, %arg2: memref<1xi32, #tpu.memory_space<smem>>) -> (i32, i32) {
    %c0_i32 = arith.constant 0 : i32
    %c0_i32_0 = arith.constant 0 : i32
    %c0_i32_1 = arith.constant 0 : i32
    return %c0_i32, %c0_i32_0 : i32, i32
  }
  func.func @transform_6(%arg0: i32, %arg1: i32, %arg2: memref<1xi32, #tpu.memory_space<smem>>) -> (i32, i32) {
    %c0_i32 = arith.constant 0 : i32
    %c0_i32_0 = arith.constant 0 : i32
    %c0_i32_1 = arith.constant 0 : i32
    return %c0_i32, %c0_i32_0 : i32, i32
  }
  func.func @transform_7(%arg0: i32, %arg1: i32, %arg2: memref<1xi32, #tpu.memory_space<smem>>) -> (i32, i32) {
    %c0_i32 = arith.constant 0 : i32
    %c0_i32_0 = arith.constant 0 : i32
    %c0_i32_1 = arith.constant 0 : i32
    return %c0_i32, %c0_i32_0 : i32, i32
  }
  func.func @transform_8(%arg0: i32, %arg1: i32, %arg2: memref<1xi32, #tpu.memory_space<smem>>) -> (i32, i32) {
    %c0_i32 = arith.constant 0 : i32
    %c0_i32_0 = arith.constant 0 : i32
    %c0_i32_1 = arith.constant 0 : i32
    return %c0_i32, %c0_i32_0 : i32, i32
  }
  func.func @transform_9(%arg0: i32, %arg1: i32, %arg2: memref<1xi32, #tpu.memory_space<smem>>) -> (i32, i32) {
    %c0_i32 = arith.constant 0 : i32
    %c0_i32_0 = arith.constant 0 : i32
    %c0_i32_1 = arith.constant 0 : i32
    return %c0_i32, %c0_i32_0 : i32, i32
  }
  func.func @transform_10(%arg0: i32, %arg1: i32, %arg2: memref<1xi32, #tpu.memory_space<smem>>) -> (i32, i32) {
    %c0_i32 = arith.constant 0 : i32
    %c0_i32_0 = arith.constant 0 : i32
    %c0_i32_1 = arith.constant 0 : i32
    return %c0_i32, %c0_i32_0 : i32, i32
  }
  func.func @transform_11(%arg0: i32, %arg1: i32, %arg2: memref<1xi32, #tpu.memory_space<smem>>) -> (i32, i32) {
    %c0_i32 = arith.constant 0 : i32
    %c0_i32_0 = arith.constant 0 : i32
    %c0_i32_1 = arith.constant 0 : i32
    return %c0_i32, %c0_i32_0 : i32, i32
  }
  func.func @transform_12(%arg0: i32, %arg1: i32, %arg2: memref<1xi32, #tpu.memory_space<smem>>) -> (i32, i32) {
    %c0_i32 = arith.constant 0 : i32
    %c0_i32_0 = arith.constant 0 : i32
    %c0_i32_1 = arith.constant 0 : i32
    return %c0_i32, %c0_i32_0 : i32, i32
  }
  func.func @transform_13(%arg0: i32, %arg1: i32, %arg2: memref<1xi32, #tpu.memory_space<smem>>) -> (i32, i32) {
    %c0_i32 = arith.constant 0 : i32
    %c0_i32_0 = arith.constant 0 : i32
    %c0_i32_1 = arith.constant 0 : i32
    return %c0_i32, %c0_i32_0 : i32, i32
  }
  func.func @transform_14(%arg0: i32, %arg1: i32, %arg2: memref<1xi32, #tpu.memory_space<smem>>) -> (i32, i32) {
    %c0_i32 = arith.constant 0 : i32
    %c0_i32_0 = arith.constant 0 : i32
    %c0_i32_1 = arith.constant 0 : i32
    return %c0_i32, %c0_i32_0 : i32, i32
  }
  func.func @transform_15(%arg0: i32, %arg1: i32, %arg2: memref<1xi32, #tpu.memory_space<smem>>) -> (i32, i32) {
    %c0_i32 = arith.constant 0 : i32
    %c0_i32_0 = arith.constant 0 : i32
    return %arg0, %c0_i32 : i32, i32
  }
}

</mosaic_0001>

<bundles_post_ra>
// kernel: critic_forward.1
= control target key start
LH: loop header
LB: loop body
LE: loop exit
PB: predicated region body
PF: predicated region fallthrough
CT: control target
= control target key end

     0   :  { %s2272_s24 = smov 0   ;;  %s2274_s25 = smov 0   ;;  %s2580_s0 = inlined_call_operand.<no memory space> [shape: s32[1], index: 0, kind: input, shape index: {}]   ;;  %s2581_s1 = inlined_call_operand.vmem [shape: u8[32,2304], index: 1, kind: input, shape index: {}]   ;;  %s2582_s2 = inlined_call_operand.vmem [shape: f32[32,4], index: 2, kind: input, shape index: {}]   ;;  %s2583_s3 = inlined_call_operand.vmem [shape: bf16[768,32], index: 3, kind: input, shape index: {}]   ;;  %s2584_s4 = inlined_call_operand.vmem [shape: f32[1,32], index: 4, kind: input, shape index: {}]   ;;  %s2585_s5 = inlined_call_operand.vmem [shape: f32[3,32,32], index: 5, kind: input, shape index: {}]   ;;  %s2586_s6 = inlined_call_operand.vmem [shape: f32[1,32], index: 6, kind: input, shape index: {}]   ;;  %s2587_s7 = inlined_call_operand.vmem [shape: f32[1,32], index: 7, kind: input, shape index: {}]   ;;  %s2588_s8 = inlined_call_operand.vmem [shape: f32[1,32], index: 8, kind: input, shape index: {}]   ;;  %s2589_s9 = inlined_call_operand.vmem [shape: bf16[32,64], index: 9, kind: input, shape index: {}]   ;;  %s2590_s10 = inlined_call_operand.vmem [shape: bf16[4,64], index: 10, kind: input, shape index: {}]   ;;  %s2591_s11 = inlined_call_operand.vmem [shape: f32[1,64], index: 11, kind: input, shape index: {}]   ;;  %s2592_s12 = inlined_call_operand.vmem [shape: bf16[64,64], index: 12, kind: input, shape index: {}]   ;;  %s2593_s13 = inlined_call_operand.vmem [shape: f32[1,64], index: 13, kind: input, shape index: {}]   ;;  %s2594_s14 = inlined_call_operand.vmem [shape: bf16[64,2], index: 14, kind: input, shape index: {}]   ;;  %s2595_s15 = inlined_call_operand.vmem [shape: f32[1,2], index: 15, kind: input, shape index: {}]   ;;  %s2596_s16 = inlined_call_operand.vmem [shape: f32[32,2], index: 16, kind: output, shape index: {}]  }
   0x1   :  { %2597 = sst [smem:[#allocation6_spill]] %s2580_s0  ;;  %s2276_s26 = smov 0  }
   0x2   :  { %2598 = sst [smem:[#allocation7_spill]] %s2585_s5  ;;  %s2599_s23 = sld [smem:[#allocation6_spill]] }
   0x8   :  { %21 = sst [smem:[#allocation4]] %s2599_s23 }
   0x9 LB: > { %s36_s27 = sadd.s32 1, %s2178_s25  ;;  %p1806_p0 = scmp.ge.s32.totalorder %s2182_s26, 1  ;;  %s2182_s26 = sphi %s2276_s26, %s27_s26   ;;  %s2178_s25 = sphi %s2274_s25, %s2604_s25   ;;  %s2174_s24 = sphi %s2272_s24, %s2603_s24  }
   0xa   : > { %p37_p1 = scmp.ge.s32.totalorder %s36_s27, 3  ;;  %p479_p2 = scmp.lt.s32.totalorder %s2182_s26, 4 }
   0xc   : > { %s2606_s27 = smov (%p37_p1, %s36_s27), 0  ;;  %p480_p3 = pnand %p1806_p0, %p479_p2 }
   0xd   : > { %2600 = sst [smem:[#allocation5_spill]] %s2606_s27  ;;  %p557_p4 = scmp.lt.s32.totalorder (!%p480_p3), %s2174_s24, 2  ;;  %v2094_v0 = vld [vmem:[%s2583_s3 + $0x40] sm:$0xff] (!%p480_p3)   ;;  %v2098_v4 = vld [vmem:[%s2583_s3 + $0x48] sm:$0xff] (!%p480_p3)   ;;  %v2102_v8 = vld [vmem:[%s2583_s3 + $0x50] sm:$0xff] (!%p480_p3)  }
   0xe   : > { %483 = sbr.rel (%p480_p3) target bundleno = 1531 (0x5fb), region = 80  ;;  %v2095_v1 = vld [vmem:[%s2583_s3 + $0xc0] sm:$0xff] (!%p480_p3)   ;;  %1894 = vmatprep.subr.bf16.mxu0 (!%p480_p3), %v2094_v0  ;;  %s2601_s5 = sld [smem:[#allocation7_spill]] (!%p480_p3)  ;;  %v2099_v5 = vld [vmem:[%s2583_s3 + $0xc8] sm:$0xff] (!%p480_p3)   ;;  %v2103_v9 = vld [vmem:[%s2583_s3 + $0xd0] sm:$0xff] (!%p480_p3)  }
   0xf   : > { %v2096_v2 = vld [vmem:[%s2583_s3] sm:$0xff] (!%p480_p3)   ;;  %1922 = vmatprep.subr.bf16.mxu1 (!%p480_p3), %v2095_v1  ;;  %v2100_v6 = vld [vmem:[%s2583_s3 + $0x8] sm:$0xff] (!%p480_p3)   ;;  %v2104_v10 = vld [vmem:[%s2583_s3 + $0x10] sm:$0xff] (!%p480_p3)   ;;  %s541_s27 = smul.u32 (!%p480_p3), 6, %s2174_s24  ;;  %p1859_p7 = scmp.ne.s32.totalorder (!%p480_p3), %s2174_s24, 0 }
  0x10   : > { %v2097_v3 = vld [vmem:[%s2583_s3 + $0x80] sm:$0xff] (!%p480_p3)   ;;  %1895 = vmatpush3.bf16.msra.mxu0 (!%p480_p3), %v2096_v2  ;;  %v2101_v7 = vld [vmem:[%s2583_s3 + $0x88] sm:$0xff] (!%p480_p3)   ;;  %v2105_v11 = vld [vmem:[%s2583_s3 + $0x90] sm:$0xff] (!%p480_p3)  }
  0x11   : > { %1923 = vmatpush3.bf16.msra.mxu1 (!%p480_p3), %v2097_v3  ;;  %1896 = vmatprep.subr.bf16.mxu0 (!%p480_p3), %v2098_v4  ;;  %v2106_v12 = vld [vmem:[%s2583_s3 + $0x58] sm:$0xff] (!%p480_p3)   ;;  %v2110_v16 = vld [vmem:[%s2583_s3 + $0x60] sm:$0xff] (!%p480_p3)   ;;  %p544_p5 = scmp.lt.s32.totalorder (!%p480_p3), %s541_s27, 17  ;;  %v2114_v20 = vld [vmem:[%s2583_s3 + $0x68] sm:$0xff] (!%p480_p3)  }
  0x12   : > { %1924 = vmatprep.subr.bf16.mxu1 (!%p480_p3), %v2099_v5  ;;  %v2107_v13 = vld [vmem:[%s2583_s3 + $0xd8] sm:$0xff] (!%p480_p3)   ;;  %v2111_v17 = vld [vmem:[%s2583_s3 + $0xe0] sm:$0xff] (!%p480_p3)   ;;  %v2115_v21 = vld [vmem:[%s2583_s3 + $0xe8] sm:$0xff] (!%p480_p3)  }
  0x13   : > { %v2108_v14 = vld [vmem:[%s2583_s3 + $0x18] sm:$0xff] (!%p480_p3)   ;;  %v2112_v18 = vld [vmem:[%s2583_s3 + $0x20] sm:$0xff] (!%p480_p3)   ;;  %v2116_v22 = vld [vmem:[%s2583_s3 + $0x28] sm:$0xff] (!%p480_p3)  }
  0x14   : > { %1897 = vmatpush3.bf16.msra.mxu0 (!%p480_p3), %v2100_v6  ;;  %v2109_v15 = vld [vmem:[%s2583_s3 + $0x98] sm:$0xff] (!%p480_p3)   ;;  %v2113_v19 = vld [vmem:[%s2583_s3 + $0xa0] sm:$0xff] (!%p480_p3)   ;;  %v2117_v23 = vld [vmem:[%s2583_s3 + $0xa8] sm:$0xff] (!%p480_p3)  }
  0x15   : > { %s558_s17 = scalar_select %p557_p4, %s2174_s24, 2  ;;  %1925 = vmatpush3.bf16.msra.mxu1 %v2101_v7  ;;  %1898 = vmatprep.subr.bf16.mxu0 %v2102_v8  ;;  %v2118_v24 = vld [vmem:[%s2583_s3 + $0x70] sm:$0xff]   ;;  %v2122_v28 = vld [vmem:[%s2583_s3 + $0x78] sm:$0xff]   ;;  %v2126_v42 = vld [vmem:[%s2583_s3 + $0x140] sm:$0xff]  }
  0x16   : > { %1926 = vmatprep.subr.bf16.mxu1 %v2103_v9  ;;  %s2608_s27 = smov (!%p544_p5, %s541_s27), 17  ;;  %v2119_v25 = vld [vmem:[%s2583_s3 + $0xf0] sm:$0xff]   ;;  %v2123_v29 = vld [vmem:[%s2583_s3 + $0xf8] sm:$0xff]   ;;  %v2127_v43 = vld [vmem:[%s2583_s3 + $0x100] sm:$0xff]   ;;  %vm1148_vm0 = vcmask (!%p1859_p7), 261120  }
  0x17   : > { %s1893_s22 = sshll.u32 %s558_s17, 5  ;;  %v2120_v26 = vld [vmem:[%s2583_s3 + $0x30] sm:$0xff]   ;;  %s1807_s20 = sshll.u32 %s2608_s27, 3  ;;  %v2124_v30 = vld [vmem:[%s2583_s3 + $0x38] sm:$0xff]   ;;  %v2128_v44 = vld [vmem:[%s2583_s3 + $0x148] sm:$0xff]  }
  0x18   : > { %s2312_s0 = scalar_lea.vmem %s2601_s5, %s1893_s22  ;;  %1899 = vmatpush3.bf16.msra.mxu0 %v2104_v10  ;;  %v2121_v27 = vld [vmem:[%s2583_s3 + $0xb0] sm:$0xff]   ;;  %s2393_s18 = scalar_lea.vmem %s2581_s1, %s1807_s20  ;;  %v2125_v31 = vld [vmem:[%s2583_s3 + $0xb8] sm:$0xff]   ;;  %v2129_v45 = vld [vmem:[%s2583_s3 + $0x108] sm:$0xff]  }
  0x19   : > { %1927 = vmatpush3.bf16.msra.mxu1 %v2105_v11  ;;  %1900 = vmatprep.subr.bf16.mxu0 %v2106_v12  ;;  %v570_v32 = vld [vmem:[%s2393_s18 + $0x8] sm:$0xff]  ;;  %v572_v33 = vld [vmem:[%s2393_s18 + $0x18] sm:$0xff]  ;;  %v569_v34 = vld [vmem:[%s2393_s18] sm:$0xff] }
  0x1a   : > { %1928 = vmatprep.subr.bf16.mxu1 %v2107_v13  ;;  %v576_v35 = vunpack.c.l.u8.bf16 %v570_v32  ;;  %v582_v36 = vunpack.c.h.u8.bf16 %v570_v32  ;;  %v578_v37 = vunpack.c.l.u8.bf16 %v572_v33  ;;  %v571_v38 = vld [vmem:[%s2393_s18 + $0x10] sm:$0xff]  ;;  %v584_v39 = vunpack.c.h.u8.bf16 %v572_v33  ;;  %v2132_v50 = vld [vmem:[%s2583_s3 + $0x158] sm:$0xff]   ;;  %v2134_v52 = vld [vmem:[%s2583_s3 + $0x160] sm:$0xff]  }
  0x1b   : > { %v575_v40 = vunpack.c.l.u8.bf16 %v569_v34  ;;  %v577_v41 = vunpack.c.l.u8.bf16 %v571_v38  ;;  %v2130_v46 = vld [vmem:[%s2583_s3 + $0x150] sm:$0xff]   ;;  %v581_v47 = vunpack.c.h.u8.bf16 %v569_v34  ;;  %v583_v48 = vunpack.c.h.u8.bf16 %v571_v38  ;;  %v2133_v51 = vld [vmem:[%s2583_s3 + $0x118] sm:$0xff]   ;;  %v574_v53 = vld [vmem:[%s2393_s18 + $0x28] sm:$0xff] }
  0x1c   : > { %1901 = vmatpush3.bf16.msra.mxu0 %v2108_v14  ;;  %1003 = vmatprep.mubr.bf16.mxu0 %v576_v35  ;;  %v2131_v49 = vld [vmem:[%s2583_s3 + $0x110] sm:$0xff]   ;;  %v2135_v54 = vld [vmem:[%s2583_s3 + $0x120] sm:$0xff]   ;;  %v580_v55 = vunpack.c.l.u8.bf16 %v574_v53  ;;  %v2136_v56 = vld [vmem:[%s2583_s3 + $0x168] sm:$0xff]   ;;  %v586_v0 = vunpack.c.h.u8.bf16 %v574_v53 }
  0x1d   : > { %1929 = vmatpush3.bf16.msra.mxu1 %v2109_v15  ;;  %1902 = vmatprep.subr.bf16.mxu0 %v2110_v16  ;;  %v2137_v57 = vld [vmem:[%s2583_s3 + $0x128] sm:$0xff]   ;;  %v2138_v58 = vld [vmem:[%s2583_s3 + $0x170] sm:$0xff]   ;;  %v2140_v60 = vld [vmem:[%s2583_s3 + $0x178] sm:$0xff]  }
  0x1e   : > { %1930 = vmatprep.subr.bf16.mxu1 %v2111_v17  ;;  %1052 = vmatprep.mubr.bf16.mxu1 %v578_v37  ;;  %v2139_v59 = vld [vmem:[%s2583_s3 + $0x130] sm:$0xff]   ;;  %v2141_v61 = vld [vmem:[%s2583_s3 + $0x138] sm:$0xff]   ;;  %v573_v62 = vld [vmem:[%s2393_s18 + $0x20] sm:$0xff]  ;;  %s1118_s18 = sld [smem:[#allocation4]] }
  0x1f   : > { %v579_v63 = vunpack.c.l.u8.bf16 %v573_v62  ;;  %v585_v1 = vunpack.c.h.u8.bf16 %v573_v62  ;;  %v1858_v38 = vld [vmem:[%s2584_s4] ss:$0 sm:$0xff] }
  0x20   : > { %1903 = vmatpush3.bf16.msra.mxu0 %v2112_v18 }
  0x21   : > { %1931 = vmatpush3.bf16.msra.mxu1 %v2113_v19  ;;  %1904 = vmatprep.subr.bf16.mxu0 %v2114_v20 }
  0x22   : > { %1932 = vmatprep.subr.bf16.mxu1 %v2115_v21 }
  0x24   : > { %1905 = vmatpush3.bf16.msra.mxu0 %v2116_v22  ;;  %p1119_p6 = scmp.gt.s32.totalorder %s1118_s18, 0 }
  0x25   : > { %1933 = vmatpush3.bf16.msra.mxu1 %v2117_v23  ;;  %1906 = vmatprep.subr.bf16.mxu0 %v2118_v24 }
  0x26   : > { %1934 = vmatprep.subr.bf16.mxu1 %v2119_v25  ;;  %s1120_s21 = scalar_select %p1119_p6, 0.003921569, 1.0 }
  0x28   : > { %1907 = vmatpush3.bf16.msra.mxu0 %v2120_v26  ;;  %v1121_v34 = vstv %s1120_s21 }
  0x29   : > { %1935 = vmatpush3.bf16.msra.mxu1 %v2121_v27  ;;  %1908 = vmatprep.subr.bf16.mxu0 %v2122_v28 }
  0x2a   : > { %1936 = vmatprep.subr.bf16.mxu1 %v2123_v29 }
  0x2c   : > { %1909 = vmatpush3.bf16.msra.mxu0 %v2124_v30 }
  0x2d   : > { %1937 = vmatpush3.bf16.msra.mxu1 %v2125_v31  ;;  %1950 = vmatprep.subr.bf16.mxu0 %v2126_v42 }
  0x2f   : > { %1004 = vmatmul.mubr.bf16.vlgmr.msra.gmra.mrb[0].mxu0 %v575_v40 }
  0x30   : > { %1053 = vmatmul.mubr.bf16.vlgmr.msra.gmra.mrb[0].mxu1 %v577_v41  ;;  %1011 = vmatprep.mubr.bf16.mxu0 %v582_v36 }
  0x31   : > { %1951 = vmatpush3.bf16.msra.mxu0 %v2127_v43  ;;  %1060 = vmatprep.mubr.bf16.mxu1 %v584_v39 }
  0x32   : > { %1952 = vmatprep.subr.bf16.mxu0 %v2128_v44 }
  0x35   : > { %1953 = vmatpush3.bf16.msra.mxu0 %v2129_v45 }
  0x36   : > { %1954 = vmatprep.subr.bf16.mxu0 %v2130_v46 }
  0x37   : > { %1012 = vmatmul.mubr.bf16.gmra.mrb[4].mxu0 %v581_v47 }
  0x38   : > { %1061 = vmatmul.mubr.bf16.gmra.mrb[4].mxu1 %v583_v48  ;;  %1101 = vmatprep.mubr.bf16.mxu0 %v580_v55 }
  0x39   : > { %1955 = vmatpush3.bf16.msra.mxu0 %v2131_v49 }
  0x3a   : > { %1956 = vmatprep.subr.bf16.mxu0 %v2132_v50 }
  0x3d   : > { %1957 = vmatpush3.bf16.msra.mxu0 %v2133_v51 }
  0x3e   : > { %1958 = vmatprep.subr.bf16.mxu0 %v2134_v52 }
  0x41   : > { %1959 = vmatpush3.bf16.msra.mxu0 %v2135_v54 }
  0x42   : > { %1960 = vmatprep.subr.bf16.mxu0 %v2136_v56  ;;  %v1860_v56 = vld [vmem:[%s2586_s6] ss:$0 sm:$0xff] (!%p1859_p7) }
  0x43   : > { %1149 = vst.msk [vmem:[#allocation2] sm:$0xff] (!%p1859_p7), %vm1148_vm0, %v1860_v56  ;;  %1150 = vst.msk [vmem:[#allocation2 + $0x8] sm:$0xff] (!%p1859_p7), %vm1148_vm0, %v1860_v56 }
  0x44   : > { %1151 = vst.msk [vmem:[#allocation2 + $0x10] sm:$0xff] (!%p1859_p7), %vm1148_vm0, %v1860_v56  ;;  %1152 = vst.msk [vmem:[#allocation2 + $0x18] sm:$0xff] (!%p1859_p7), %vm1148_vm0, %v1860_v56 }
  0x45   : > { %1961 = vmatpush3.bf16.msra.mxu0 %v2137_v57 }
  0x46   : > { %1962 = vmatprep.subr.bf16.mxu0 %v2138_v58 }
  0x49   : > { %1963 = vmatpush3.bf16.msra.mxu0 %v2139_v59 }
  0x4a   : > { %1964 = vmatprep.subr.bf16.mxu0 %v2140_v60 }
  0x4d   : > { %1965 = vmatpush3.bf16.msra.mxu0 %v2141_v61 }
  0x50   : > { %1102 = vmatmul.mubr.bf16.vlgmr.msra.gmra.mrb[8].mxu0 %v579_v63 }
  0x51   : > { %1109 = vmatprep.mubr.bf16.mxu0 %v586_v0 }
  0x58   : > { %1110 = vmatmul.mubr.bf16.gmra.mrb[12].mxu0 %v585_v1 }
 0x102   : > { %v1910_v2 = vpop.f32.mrb[0].mxu0 }
 0x103   : > { %v1938_v3 = vpop.f32.mrb[0].mxu1  ;;  %v1911_v4 = vpop.f32.mrb[1].mxu0 }
 0x104   : > { %v1939_v5 = vpop.f32.mrb[1].mxu1  ;;  %v1912_v6 = vadd.f32 %v1911_v4, %v1910_v2  ;;  %v1913_v8 = vpop.f32.mrb[2].mxu0 }
 0x105   : > { %v1940_v7 = vadd.f32 %v1939_v5, %v1938_v3  ;;  %v1941_v9 = vpop.f32.mrb[2].mxu1  ;;  %v1914_v10 = vpop.f32.mrb[3].mxu0 }
 0x106   : > { %v1942_v11 = vpop.f32.mrb[3].mxu1  ;;  %v1915_v13 = vadd.f32 %v1914_v10, %v1913_v8 }
 0x107   : > { %v1055_v12 = vadd.f32 %v1940_v7, %v1912_v6  ;;  %v1943_v14 = vadd.f32 %v1942_v11, %v1941_v9 }
 0x109   : > { %v1058_v15 = vadd.f32 %v1943_v14, %v1915_v13 }
 0x10a   : > { %v1916_v16 = vpop.f32.mrb[4].mxu0 }
 0x10b   : > { %v1944_v17 = vpop.f32.mrb[4].mxu1  ;;  %v1917_v18 = vpop.f32.mrb[5].mxu0 }
 0x10c   : > { %v1945_v19 = vpop.f32.mrb[5].mxu1  ;;  %v1918_v20 = vadd.f32 %v1917_v18, %v1916_v16  ;;  %v1919_v22 = vpop.f32.mrb[6].mxu0 }
 0x10d   : > { %v1946_v21 = vadd.f32 %v1945_v19, %v1944_v17  ;;  %v1947_v23 = vpop.f32.mrb[6].mxu1  ;;  %v1920_v24 = vpop.f32.mrb[7].mxu0 }
 0x10e   : > { %v1948_v25 = vpop.f32.mrb[7].mxu1  ;;  %v1921_v27 = vadd.f32 %v1920_v24, %v1919_v22 }
 0x10f   : > { %v1063_v26 = vadd.f32 %v1946_v21, %v1918_v20  ;;  %v1949_v28 = vadd.f32 %v1948_v25, %v1947_v23 }
 0x111   : > { %v1066_v29 = vadd.f32 %v1949_v28, %v1921_v27 }
 0x123   : > { %v1966_v30 = vpop.f32.mrb[8].mxu0 }
 0x124   : > { %v1967_v31 = vpop.f32.mrb[9].mxu0 }
 0x125   : > { %v1968_v32 = vadd.f32 %v1967_v31, %v1966_v30  ;;  %v1969_v33 = vpop.f32.mrb[10].mxu0 }
 0x126   : > { %v1970_v35 = vpop.f32.mrb[11].mxu0 }
 0x127   : > { %v1104_v36 = vadd.f32 %v1968_v32, %v1055_v12  ;;  %v1971_v37 = vadd.f32 %v1970_v35, %v1969_v33 }
 0x129   : > { %v1122_v39 = vmul.f32 %v1121_v34, %v1104_v36  ;;  %v1107_v40 = vadd.f32 %v1971_v37, %v1058_v15 }
 0x12b   : > { %v1133_v41 = vadd.f32 %v1858_v38, %v1122_v39  ;;  %v1123_v42 = vmul.f32 %v1121_v34, %v1107_v40  ;;  %v1972_v43 = vpop.f32.mrb[12].mxu0 }
 0x12c   : > { %v1973_v44 = vpop.f32.mrb[13].mxu0 }
 0x12d   : > { %v1134_v45 = vadd.f32 %v1858_v38, %v1123_v42  ;;  %v1974_v46 = vadd.f32 %v1973_v44, %v1972_v43  ;;  %v1975_v47 = vpop.f32.mrb[14].mxu0 }
 0x12e   : > { %v1976_v48 = vpop.f32.mrb[15].mxu0 }
 0x12f   : > { %v1112_v49 = vadd.f32 %v1974_v46, %v1063_v26  ;;  %v1977_v50 = vadd.f32 %v1976_v48, %v1975_v47  ;;  %1140 = sbr.rel (%p1859_p7) target bundleno = 310 (0x136), region = 84 }
 0x131   : > { %v1124_v51 = vmul.f32 %v1121_v34, %v1112_v49  ;;  %v1115_v52 = vadd.f32 %v1977_v50, %v1066_v29 }
 0x133   : > { %v1135_v53 = vadd.f32 %v1858_v38, %v1124_v51  ;;  %v1125_v54 = vmul.f32 %v1121_v34, %v1115_v52 }
 0x135   : > { %v1136_v55 = vadd.f32 %v1858_v38, %v1125_v54 }
 0x136 PF: > { %v1157_v57 = vld [vmem:[%s2312_s0] sm:$0xff]  ;;  %v1158_v58 = vld [vmem:[%s2312_s0 + $0x8] sm:$0xff]  ;;  %v1159_v59 = vld [vmem:[%s2312_s0 + $0x10] sm:$0xff]  ;;  %vm1161_vm1 = vcmask 261120   ;;  %p1865_p8 = scmp.ne.s32.totalorder %s2174_s24, 2 }
 0x137   : > { %v2057_v60 = vpack.c.bf16 %v1158_v58, %v1157_v57  ;;  %v1160_v61 = vld [vmem:[%s2312_s0 + $0x18] sm:$0xff]  ;;  %2013 = vmatprep.mubr.msk.f32.mxu1 %vm1161_vm1, %v1133_v41  ;;  %v1154_v63 = vld [vmem:[#allocation2 + $0x8] sm:$0xff]  ;;  %v1153_v0 = vld [vmem:[#allocation2] sm:$0xff]  ;;  %vm1370_vm2 = vcmask (!%p1865_p8), 1041408   ;;  %vm1363_vm3 = vcmask (!%p1865_p8), 31744   ;;  %vm1546_vm4 = vcmask (!%p1865_p8), 523264  }
 0x138   : > { %v2061_v62 = vpack.c.bf16 %v1160_v61, %v1159_v59  ;;  %v1156_v5 = vld [vmem:[#allocation2 + $0x18] sm:$0xff]  ;;  %v1155_v6 = vld [vmem:[#allocation2 + $0x10] sm:$0xff]  ;;  %v2142_v39 = vld [vmem:[%s2589_s9] sm:$0xff] (!%p1865_p8)   ;;  %vm1702_vm5 = vcmask (!%p1865_p8), 15360  }
 0x139   : > { %2058 = vmatprep.subr.bf16.mxu1 %v2057_v60  ;;  %v1362_v40 = vld [vmem:[%s2590_s10] sm:$0x3] (!%p1865_p8)  ;;  %v1351_v43 = vld [vmem:[%s2582_s2 + $0x8] sm:$0xff] (!%p1865_p8)  ;;  %2025 = vmatprep.subr.bf16.mxu0 (!%p1865_p8), %v2142_v39  ;;  %v1352_v46 = vld [vmem:[%s2582_s2 + $0x10] sm:$0xff] (!%p1865_p8) }
 0x13a   : > { %2060 = vmatpush3.bf16.msra.mxu1 %v2057_v60  ;;  %v1350_v41 = vld [vmem:[%s2582_s2] sm:$0xff] (!%p1865_p8)  ;;  %v1372_v42 = vsel (!%p1865_p8), %vm1370_vm2, %v1362_v40, 0  ;;  %v2143_v44 = vld [vmem:[%s2589_s9 + $0x8] sm:$0xff] (!%p1865_p8)   ;;  %2026 = vmatpush3.bf16.msra.mxu0 (!%p1865_p8), %v2142_v39  ;;  %v1353_v47 = vld [vmem:[%s2582_s2 + $0x18] sm:$0xff] (!%p1865_p8) }
 0x13b   : > { %2062 = vmatprep.subr.bf16.mxu1 %v2061_v62  ;;  %2027 = vmatprep.subr.bf16.mxu0 (!%p1865_p8), %v2143_v44  ;;  %v1361_v48 = vpack.c.bf16 (!%p1865_p8), %v1353_v47, %v1352_v46  ;;  %v2144_v49 = vld [vmem:[%s2592_s12] sm:$0xff] (!%p1865_p8)   ;;  %v2150_v46 = vld [vmem:[%s2594_s14 + $0x10] sm:$0xff] (!%p1865_p8)   ;;  %v2151_v47 = vld [vmem:[%s2594_s14 + $0x18] sm:$0xff] (!%p1865_p8)  }
 0x13e   : > { %2064 = vmatpush3.bf16.msra.mxu1 %v2061_v62  ;;  %2028 = vmatpush3.bf16.msra.mxu0 (!%p1865_p8), %v2143_v44 }
 0x13f   : > { %2069 = vmatprep.subr.msk.bf16.mxu1 (!%p1865_p8), %vm1370_vm2, %v1362_v40 }
 0x141   : > { %2014 = vmatmul.mubr.msk.f32.vlgmr.msra.gmra.mrb[8].mxu1 %vm1161_vm1, %v1134_v45  ;;  %v1360_v45 = vpack.c.bf16 (!%p1865_p8), %v1351_v43, %v1350_v41 }
 0x142   : > { %2016 = vmatprep.mubr.msk.f32.mxu1 %vm1161_vm1, %v1135_v53  ;;  %2020 = vmatpush3.bf16.msra.mxu1 (!%p1865_p8), %v1372_v42 }
 0x143   : > { %2033 = vmatprep.subr.bf16.mxu1 (!%p1865_p8), %v2144_v49 }
 0x145   : > { %2017 = vmatmul.mubr.msk.f32.gmra.mrb[10].mxu1 %vm1161_vm1, %v1136_v55 }
 0x146   : > { %2021 = vmatprep.mubr.msk.bf16.mxu1 (!%p1865_p8), %vm1363_vm3, %v1360_v45 }
 0x149   : > { %2022 = vmatmul.mubr.msk.bf16.vlgmr.msra.gmra.mrb[0].mxu1 (!%p1865_p8), %vm1363_vm3, %v1361_v48  ;;  %v1875_v48 = vld [vmem:[%s2593_s13] ss:$0 sm:$0xff] (!%p1865_p8) }
 0x14a   : > { %2034 = vmatpush3.bf16.msra.mxu1 (!%p1865_p8), %v2144_v49 }
 0x214   : > { %v2015_v1 = vpop.f32.mrb[8].mxu1 }
 0x215   : > { %v1260_v2 = vadd.f32 %v2015_v1, %v1154_v63  ;;  %v1240_v3 = vpop.f32.mrb[9].mxu1 }
 0x216   : > { %v1259_v4 = vadd.f32 %v1240_v3, %v1153_v0  ;;  %1270 = sbr.rel (%p1865_p8) target bundleno = 1531 (0x5fb), region = 88  ;;  %v1866_v0 = vld [vmem:[%s2587_s7] ss:$0 sm:$0xff] (!%p1865_p8) }
 0x217   : > { %1264 = vst.msk [vmem:[#allocation2 + $0x8] sm:$0xff] %vm1161_vm1, %v1260_v2 }
 0x218   : > { %1263 = vst.msk [vmem:[#allocation2] sm:$0xff] %vm1161_vm1, %v1259_v4  ;;  %v2018_v7 = vpop.f32.mrb[10].mxu1 }
 0x219   : > { %v1262_v8 = vadd.f32 %v2018_v7, %v1156_v5  ;;  %v1250_v9 = vpop.f32.mrb[11].mxu1  ;;  %v1867_v5 = vld [vmem:[%s2588_s8] ss:$0 sm:$0xff] (!%p1865_p8) }
 0x21a   : > { %v1261_v10 = vadd.f32 %v1250_v9, %v1155_v6 }
 0x21b   : > { %1266 = vst.msk [vmem:[#allocation2 + $0x18] sm:$0xff] %vm1161_vm1, %v1262_v8 }
 0x21c   : > { %1265 = vst.msk [vmem:[#allocation2 + $0x10] sm:$0xff] %vm1161_vm1, %v1261_v10 }
 0x21e   : > { %v1272_v13 = vld [vmem:[#allocation2 + $0x8] sm:$0xff] }
 0x21f   : > { %v1271_v11 = vld [vmem:[#allocation2] sm:$0xff]  ;;  %v1278_v17 = vsel %vm1161_vm1, %v1272_v13, 0.0 }
 0x220   : > { %v1275_v14 = vsel %vm1161_vm1, %v1271_v11, 0.0 }
 0x221   : > { %1276 = vadd.xlane.f32.xlu0 %v1275_v14 }
 0x222   : > { %v1274_v16 = vld [vmem:[#allocation2 + $0x18] sm:$0xff] }
 0x223   : > { %v1273_v12 = vld [vmem:[#allocation2 + $0x10] sm:$0xff]  ;;  %v1284_v18 = vsel %vm1161_vm1, %v1274_v16, 0.0 }
 0x224   : > { %v1281_v15 = vsel %vm1161_vm1, %v1273_v12, 0.0 }
 0x225   : > { %1282 = vadd.xlane.f32.xlu1 %v1281_v15  ;;  %1279 = vadd.xlane.f32.xlu0 %v1278_v17 }
 0x229   : > { %1285 = vadd.xlane.f32.xlu1 %v1284_v18  ;;  %v2023_v18 = vpop.f32.mrb[0].mxu1 }
 0x2ae   : > { %v1277_v19 = vpop.xlane.xlu0 %1276 }
 0x2af   : > { %v1288_v21 = vmul.f32 0.03125, %v1277_v19  ;;  %v1408_v19 = vpop.f32.mrb[1].mxu1 }
 0x2b1   : > { %v1292_v23 = vsub.f32 %v1271_v11, %v1288_v21  ;;  %v2145_v21 = vld [vmem:[%s2592_s12 + $0x8] sm:$0xff]  }
 0x2b2   : > { %v1283_v20 = vpop.xlane.xlu1 %1282  ;;  %v1280_v25 = vpop.xlane.xlu0 %1279  ;;  %2035 = vmatprep.subr.bf16.mxu1 %v2145_v21 }
 0x2b3   : > { %v1290_v22 = vmul.f32 0.03125, %v1283_v20  ;;  %v1289_v27 = vmul.f32 0.03125, %v1280_v25  ;;  %v1296_v29 = vmul.f32 %v1292_v23, %v1292_v23  ;;  %v2024_v20 = vpop.f32.mrb[2].mxu1  ;;  %2036 = vmatpush3.bf16.msra.mxu1 %v2145_v21  ;;  %v2148_v25 = vld [vmem:[%s2594_s14] sm:$0xff]  }
 0x2b4   : > { %2045 = vmatprep.subr.bf16.mxu0 %v2148_v25 }
 0x2b5   : > { %v2479_v24 = vsub.f32 %v1273_v12, %v1290_v22  ;;  %v1293_v31 = vsub.f32 %v1272_v13, %v1289_v27  ;;  %v1300_v33 = vsel %vm1161_vm1, %v1296_v29, 0.0  ;;  %v1411_v22 = vpop.f32.mrb[3].mxu1 }
 0x2b6   : > { %v1286_v26 = vpop.xlane.xlu1 %1285  ;;  %1301 = vadd.xlane.f32.xlu0 %v1300_v33 }
 0x2b7   : > { %v1291_v28 = vmul.f32 0.03125, %v1286_v26  ;;  %v1298_v30 = vmul.f32 %v2479_v24, %v2479_v24  ;;  %v1297_v35 = vmul.f32 %v1293_v31, %v1293_v31  ;;  %v2149_v26 = vld [vmem:[%s2594_s14 + $0x8] sm:$0xff]  }
 0x2b9   : > { %v2483_v32 = vsub.f32 %v1274_v16, %v1291_v28  ;;  %v1306_v34 = vsel %vm1161_vm1, %v1298_v30, 0.0  ;;  %v1303_v37 = vsel %vm1161_vm1, %v1297_v35, 0.0  ;;  %v1874_v28 = vld [vmem:[%s2591_s11] ss:$0 sm:$0xff] }
 0x2ba   : > { %1307 = vadd.xlane.f32.xlu0 %v1306_v34  ;;  %1304 = vadd.xlane.f32.xlu1 %v1303_v37 }
 0x2bb   : > { %v1299_v36 = vmul.f32 %v2483_v32, %v2483_v32 }
 0x2bd   : > { %v1309_v38 = vsel %vm1161_vm1, %v1299_v36, 0.0 }
 0x2be   : > { %1310 = vadd.xlane.f32.xlu1 %v1309_v38 }
 0x343   : > { %v1302_v50 = vpop.xlane.xlu0 %1301 }
 0x344   : > { %v1312_v51 = vmul.f32 0.03125, %v1302_v50 }
 0x346   : > { %v1316_v52 = vadd.f32 1e-05, %v1312_v51 }
 0x347   : > { %v1305_v53 = vpop.xlane.xlu1 %1304  ;;  %v1308_v54 = vpop.xlane.xlu0 %1307 }
 0x348   : > { %2152 = vrsqrt.f32 %v1316_v52  ;;  %v1313_v55 = vmul.f32 0.03125, %v1305_v53  ;;  %v1314_v56 = vmul.f32 0.03125, %v1308_v54 }
 0x34a   : > { %v1317_v57 = vadd.f32 1e-05, %v1313_v55  ;;  %v1318_v58 = vadd.f32 1e-05, %v1314_v56 }
 0x34b   : > { %v1311_v59 = vpop.xlane.xlu1 %1310 }
 0x34c   : > { %2154 = vrsqrt.f32 %v1317_v57  ;;  %v1315_v60 = vmul.f32 0.03125, %v1311_v59 }
 0x34d   : > { %2156 = vrsqrt.f32 %v1318_v58 }
 0x34e   : > { %v1319_v61 = vadd.f32 1e-05, %v1315_v60 }
 0x350   : > { %2158 = vrsqrt.f32 %v1319_v61 }
 0x352   : > { %v2153_v62 = vpop.eup %2152 }
 0x353   : > { %v1324_v63 = vmul.f32 %v2153_v62, %v1292_v23  ;;  %v2146_v23 = vld [vmem:[%s2592_s12 + $0x10] sm:$0xff]  }
 0x354   : > { %2037 = vmatprep.subr.bf16.mxu1 %v2146_v23 }
 0x355   : > { %v1335_v4 = vmul.f32 %v1866_v0, %v1324_v63  ;;  %2038 = vmatpush3.bf16.msra.mxu1 %v2146_v23  ;;  %v1882_v63 = vld [vmem:[%s2595_s15] ss:$0 sm:$0xff] }
 0x356   : > { %v2155_v1 = vpop.eup %2154 }
 0x357   : > { %v2157_v2 = vpop.eup %2156  ;;  %v1325_v3 = vmul.f32 %v2155_v1, %v1293_v31  ;;  %v1346_v9 = vadd.f32 %v1867_v5, %v1335_v4 }
 0x358   : > { %v1326_v6 = vmul.f32 %v2157_v2, %v2479_v24  ;;  %v2147_v24 = vld [vmem:[%s2592_s12 + $0x18] sm:$0xff]  }
 0x359   : > { %v1336_v7 = vmul.f32 %v1866_v0, %v1325_v3  ;;  %2039 = vmatprep.subr.bf16.mxu1 %v2147_v24 }
 0x35a   : > { %v2159_v8 = vpop.eup %2158  ;;  %v1337_v12 = vmul.f32 %v1866_v0, %v1326_v6  ;;  %2040 = vmatpush3.bf16.msra.mxu1 %v2147_v24 }
 0x35b   : > { %v1347_v10 = vadd.f32 %v1867_v5, %v1336_v7  ;;  %v1327_v11 = vmul.f32 %v2159_v8, %v2483_v32 }
 0x35c   : > { %v1348_v15 = vadd.f32 %v1867_v5, %v1337_v12 }
 0x35d   : > { %v1354_v13 = vpack.c.bf16 %v1347_v10, %v1346_v9  ;;  %v1338_v14 = vmul.f32 %v1866_v0, %v1327_v11 }
 0x35f   : > { %2029 = vmatprep.mubr.msk.bf16.mxu0 %vm1161_vm1, %v1354_v13  ;;  %v1349_v16 = vadd.f32 %v1867_v5, %v1338_v14 }
 0x361   : > { %v1355_v17 = vpack.c.bf16 %v1349_v16, %v1348_v15 }
 0x363   : > { %2030 = vmatmul.mubr.msk.bf16.vlgmr.msra.gmra.mrb[0].mxu0 %vm1161_vm1, %v1355_v17 }
 0x364   : > { %2046 = vmatpush3.bf16.msra.mxu0 %v2148_v25 }
 0x365   : > { %2047 = vmatprep.subr.bf16.mxu0 %v2149_v26 }
 0x368   : > { %2048 = vmatpush3.bf16.msra.mxu0 %v2149_v26 }
 0x369   : > { %2049 = vmatprep.subr.bf16.mxu0 %v2150_v46 }
 0x36c   : > { %2050 = vmatpush3.bf16.msra.mxu0 %v2150_v46 }
 0x36d   : > { %2051 = vmatprep.subr.bf16.mxu0 %v2151_v47 }
 0x370   : > { %2052 = vmatpush3.bf16.msra.mxu0 %v2151_v47 }
 0x436   : > { %v2031_v27 = vpop.f32.mrb[0].mxu0 }
 0x437   : > { %v1484_v29 = vadd.f32 %v2031_v27, %v2023_v18  ;;  %v1475_v30 = vpop.f32.mrb[1].mxu0 }
 0x438   : > { %v1476_v31 = vadd.f32 %v1475_v30, %v1408_v19  ;;  %v2032_v32 = vpop.f32.mrb[2].mxu0 }
 0x439   : > { %v1499_v33 = vadd.f32 %v1874_v28, %v1484_v29  ;;  %v1487_v34 = vadd.f32 %v2032_v32, %v2024_v20  ;;  %v1478_v35 = vpop.f32.mrb[3].mxu0 }
 0x43a   : > { %v1497_v36 = vadd.f32 %v1874_v28, %v1476_v31  ;;  %v1479_v37 = vadd.f32 %v1478_v35, %v1411_v22 }
 0x43b   : > { %v1500_v38 = vadd.f32 %v1874_v28, %v1487_v34  ;;  %v1503_v40 = vmax.f32 %v1499_v33, 0.0 }
 0x43c   : > { %v1498_v39 = vadd.f32 %v1874_v28, %v1479_v37  ;;  %v1501_v42 = vmax.f32 %v1497_v36, 0.0 }
 0x43d   : > { %v1504_v41 = vmax.f32 %v1500_v38, 0.0 }
 0x43e   : > { %v1502_v43 = vmax.f32 %v1498_v39, 0.0 }
 0x43f   : > { %v1506_v44 = vpack.c.bf16 %v1504_v41, %v1503_v40 }
 0x440   : > { %v1505_v45 = vpack.c.bf16 %v1502_v43, %v1501_v42 }
 0x442   : > { %2041 = vmatprep.mubr.msk.bf16.mxu1 %vm1546_vm4, %v1505_v45 }
 0x443   : > { %2042 = vmatmul.mubr.msk.bf16.vlgmr.msra.gmra.mrb[4].mxu1 %vm1546_vm4, %v1506_v44 }
 0x516   : > { %v2043_v49 = vpop.f32.mrb[4].mxu1 }
 0x517   : > { %v1596_v50 = vadd.f32 %v2043_v49, %v1875_v48  ;;  %v1587_v51 = vpop.f32.mrb[5].mxu1 }
 0x518   : > { %v1588_v52 = vadd.f32 %v1875_v48, %v1587_v51  ;;  %v2044_v53 = vpop.f32.mrb[6].mxu1 }
 0x519   : > { %v1599_v54 = vadd.f32 %v2044_v53, %v1875_v48  ;;  %v1590_v55 = vpop.f32.mrb[7].mxu1  ;;  %v1604_v57 = vmax.f32 %v1596_v50, 0.0 }
 0x51a   : > { %v1591_v56 = vadd.f32 %v1875_v48, %v1590_v55  ;;  %v1602_v59 = vmax.f32 %v1588_v52, 0.0 }
 0x51b   : > { %v1605_v58 = vmax.f32 %v1599_v54, 0.0 }
 0x51c   : > { %v1603_v60 = vmax.f32 %v1591_v56, 0.0 }
 0x51d   : > { %v1607_v61 = vpack.c.bf16 %v1605_v58, %v1604_v57 }
 0x51e   : > { %v1606_v62 = vpack.c.bf16 %v1603_v60, %v1602_v59 }
 0x520   : > { %2053 = vmatprep.mubr.msk.bf16.mxu0 %vm1546_vm4, %v1606_v62 }
 0x521   : > { %2054 = vmatmul.mubr.msk.bf16.vlgmr.msra.gmra.mrb[4].mxu0 %vm1546_vm4, %v1607_v61 }
 0x5f4   : > { %v2055_v0 = vpop.f32.mrb[4].mxu0 }
 0x5f5   : > { %v1696_v1 = vadd.f32 %v2055_v0, %v1882_v63  ;;  %v1687_v2 = vpop.f32.mrb[5].mxu0 }
 0x5f6   : > { %v1688_v3 = vadd.f32 %v1882_v63, %v1687_v2  ;;  %v2056_v4 = vpop.f32.mrb[6].mxu0 }
 0x5f7   : > { %1705 = vst.msk [vmem:[%s2596_s16 + $0x10] sm:$0xff] %vm1702_vm5, %v1696_v1  ;;  %v1699_v5 = vadd.f32 %v2056_v4, %v1882_v63  ;;  %v1690_v6 = vpop.f32.mrb[7].mxu0 }
 0x5f8   : > { %1703 = vst.msk [vmem:[%s2596_s16] sm:$0xff] %vm1702_vm5, %v1688_v3  ;;  %v1691_v7 = vadd.f32 %v1882_v63, %v1690_v6 }
 0x5f9   : > { %1706 = vst.msk [vmem:[%s2596_s16 + $0x18] sm:$0xff] %vm1702_vm5, %v1699_v5 }
 0x5fa   : > { %1704 = vst.msk [vmem:[%s2596_s16 + $0x8] sm:$0xff] %vm1702_vm5, %v1691_v7 }
 0x5fb PF: > { %s27_s26 = sadd.s32 1, %s2182_s26   ;;  %s2602_s19 = sld [smem:[#allocation5_spill]] }
 0x5fc   : > { %p24_p9 = scmp.ge.s32.totalorder %s27_s26, 5   ;;  %s2603_s24 = smov %s2178_s25 }
 0x5fe   :  { %26 = sbr.rel (!%p24_p9) target bundleno = 9 (0x9), region = 124 }
 0x601   : > { %s2604_s25 = smov %s2602_s19 }

</bundles_post_ra>
